<compile_context>
chip_gen: v7x
topology: tpu7x:2x2x1
jax: 0.10.0
libtpu: 0.0.40
codegen_flags: <defaults>
</compile_context>

<pallas_src>
import functools

import jax
import jax.numpy as jnp
from jax.experimental import pallas as pl
from jax.experimental.pallas import tpu as pltpu

_LANES = 128
_SUB = 8


def _cdiv(a, b):
    return -(-a // b)


def _round_up(a, b):
    return _cdiv(a, b) * b


def _color_loss_kernel(x_ref, y_ref, out_ref, *, eps, valid_rows, chunk,
                       ragged, fold8):
    """Per (batch-group, outer-spatial, inner-spatial) grid step.

    x_ref, y_ref : VMEM (Nb, C, tile_s, 128) input tiles.
    out_ref      : VMEM (Nb, acc_rows, 128) f32 per-batch partial-sum
                   accumulator, resident across the inner ("arbitrary") axis.
    """
    i = pl.program_id(2)

    @pl.when(i == 0)
    def _():
        out_ref[...] = jnp.zeros_like(out_ref)

    nb, n_chan, tile_s, _ = x_ref.shape
    eps2 = jnp.float32(eps * eps)

    # First row of real pixels handled by this block; rows at or past
    # `rows_left` within the block are out-of-bounds (unspecified) data.
    s_block = pl.program_id(1) * pl.num_programs(2) + i
    rows_left = valid_rows - s_block * tile_s

    if ragged:
        row_iota = jax.lax.broadcasted_iota(jnp.int32, (1, chunk, _LANES), 1)

    def chunk_cos(row_start, limit):
        """Cosine similarity for rows [row_start, row_start + chunk)."""
        x0 = x_ref[:, 0, pl.ds(row_start, chunk), :].astype(jnp.float32)
        y0 = y_ref[:, 0, pl.ds(row_start, chunk), :].astype(jnp.float32)
        s_xy = x0 * y0
        s_xx = x0 * x0
        s_yy = y0 * y0
        for c in range(1, n_chan):            # short unrolled VPU FMA loop
            xc = x_ref[:, c, pl.ds(row_start, chunk), :].astype(jnp.float32)
            yc = y_ref[:, c, pl.ds(row_start, chunk), :].astype(jnp.float32)
            s_xy = s_xy + xc * yc
            s_xx = s_xx + xc * xc
            s_yy = s_yy + yc * yc
        # torch cosine_similarity: w12 / max(||x||*||y||, eps)
        #                        = w12 * rsqrt(max(w1*w2, eps^2))   (EUP rsqrt)
        cos = s_xy * jax.lax.rsqrt(jnp.maximum(s_xx * s_yy, eps2))
        if ragged:
            # Out-of-bounds rows of a ragged last tile hold unspecified data:
            # zero their contribution (jnp.where also kills NaN/inf garbage).
            cos = jnp.where(row_iota < limit, cos, jnp.float32(0.0))
        return cos                             # (Nb, chunk, 128) f32

    if fold8:
        # tile_s is a multiple of `chunk` (itself a multiple of 8): loop over
        # row chunks, folding each one onto an aligned (Nb, 8, 128) partial
        # sum kept in vregs (no full-tile f32 intermediates in VMEM).
        n_chunks = tile_s // chunk

        def body(k, acc):
            r = pl.multiple_of(k * chunk, chunk)
            cos = chunk_cos(r, rows_left - k * chunk)
            return acc + jnp.sum(
                cos.reshape(nb, chunk // _SUB, _SUB, _LANES), axis=1)

        acc = jax.lax.fori_loop(
            0, n_chunks, body, jnp.zeros((nb, _SUB, _LANES), jnp.float32))
        out_ref[...] += acc
    else:
        # Tiny images whose row count is not a multiple of 8: single chunk,
        # fold everything onto a (Nb, 1, 128) accumulator.
        cos = chunk_cos(0, rows_left)
        out_ref[...] += jnp.sum(cos, axis=1, keepdims=True)


def color_loss(X, Y, eps=1e-6):
    """X, Y: (N, C, H, W) arrays. Returns scalar f32 loss (matches torch)."""
    assert X.shape == Y.shape
    N, C, H, W = X.shape
    HW = H * W
    itemsize = jnp.dtype(X.dtype).itemsize

    x = X.reshape(N, C, HW)
    y = Y.reshape(N, C, HW)

    # Lane alignment. When HW is a multiple of 128 (the common case) this is a
    # free reshape and no data is copied; otherwise pad by < 128 elements per
    # (n, c) row.  Zero padding is exact: cos(0, 0) == 0 under the eps clamp.
    # TODO(synk): a fully copy-free path for HW % 128 != 0 would need a flat
    # (C, HW) block layout with the channel dim on the sublane axis.
    if HW % _LANES:
        pad = _LANES - HW % _LANES
        x = jnp.pad(x, ((0, 0), (0, 0), (0, pad)))
        y = jnp.pad(y, ((0, 0), (0, 0), (0, pad)))
    S = x.shape[-1] // _LANES                  # rows of 128 lanes per image
    x = x.reshape(N, C, S, _LANES)
    y = y.reshape(N, C, S, _LANES)

    # Per-input-block VMEM budget (2 inputs x 2 pipeline buffers fit easily in
    # the explicit 32 MiB scoped limit on every generation).
    block_budget = 4 * 1024 * 1024

    if S < _LANES:
        # Small images: one spatial tile; pack batch items per grid step so a
        # step moves a decent DMA while in-register chunks stay <= 128 rows.
        tile_s = S
        chunk = S
        fold8 = (S % _SUB == 0)
        ragged = False
        nb = 1
        for d in range(min(N, max(1, 128 // S)), 0, -1):
            if N % d == 0 and d * C * S * _LANES * itemsize <= block_budget:
                nb = d
                break
        t_s = 1
    else:
        # Large images: balanced tiles, multiples of 64 rows, <= block_budget;
        # the ragged last tile (if any) is masked in the kernel, never padded.
        fold8 = True
        chunk = 64
        nb = 1
        cap_rows = max(chunk,
                       (block_budget // (C * _LANES * itemsize)) // chunk * chunk)
        n_blocks = _cdiv(S, cap_rows)
        if N % 2 == 1:
            # Help v7x megacore: aim for an even number of spatial tiles when
            # the batch axis alone cannot balance the two TensorCores.
            n_blocks = _round_up(max(n_blocks, 2), 2)
        tile_s = min(_round_up(_cdiv(S, n_blocks), chunk), (S // chunk) * chunk)
        t_s = _cdiv(S, tile_s)
        ragged = (t_s * tile_s != S)

    acc_rows = _SUB if fold8 else 1
    n_outer = 2 if (t_s >= 2 and t_s % 2 == 0) else 1
    n_inner = t_s // n_outer
    grid = (N // nb, n_outer, n_inner)

    in_spec = pl.BlockSpec(
        (nb, C, tile_s, _LANES),
        lambda b, o, i: (b, 0, o * n_inner + i, 0),
    )
    out_spec = pl.BlockSpec(
        (nb, pl.Squeezed(), acc_rows, _LANES),
        lambda b, o, i: (b, o, 0, 0),
    )

    kernel = functools.partial(
        _color_loss_kernel,
        eps=float(eps),
        valid_rows=S,
        chunk=chunk,
        ragged=ragged,
        fold8=fold8,
    )

    partials = pl.pallas_call(
        kernel,
        out_shape=jax.ShapeDtypeStruct((N, n_outer, acc_rows, _LANES),
                                       jnp.float32),
        grid=grid,
        in_specs=[in_spec, in_spec],
        out_specs=out_spec,
        compiler_params=pltpu.CompilerParams(
            dimension_semantics=("parallel", "parallel", "arbitrary"),
            vmem_limit_bytes=32 * 1024 * 1024,
        ),
    )(x, y)

    # Tiny epilogue in plain JAX: (N, n_outer, acc_rows, 128) -> (N,) -> scalar.
    per_batch_sum = jnp.sum(partials, axis=(1, 2, 3))
    return jnp.mean(jnp.float32(1.0) - per_batch_sum / jnp.float32(HW))


def _reference_color_loss(X, Y, eps=1e-6):
    """Pure-JAX reference mirroring the PyTorch module."""
    Xf = X.astype(jnp.float32)
    Yf = Y.astype(jnp.float32)
    w12 = jnp.sum(Xf * Yf, axis=1)
    w1 = jnp.sum(Xf * Xf, axis=1)
    w2 = jnp.sum(Yf * Yf, axis=1)
    cos = w12 / jnp.sqrt(jnp.maximum(w1 * w2, eps * eps))   # (N, H, W)
    loss = jnp.sum(jnp.sum(cos, axis=2), axis=1)            # (N,)
    loss = loss / (X.shape[2] * X.shape[3])
    return jnp.mean(1.0 - loss)


if __name__ == "__main__":
    key = jax.random.PRNGKey(0)
    k1, k2, k3, k4 = jax.random.split(key, 4)

    # Small NCHW tensors consistent with the module (exercises the packed
    # small-image path).
    X1 = jax.random.uniform(k1, (2, 4, 16, 16), dtype=jnp.float32)
    Y1 = jax.random.uniform(k2, (2, 4, 16, 16), dtype=jnp.float32)
    out1 = jax.block_until_ready(color_loss(X1, Y1))
    ref1 = jax.block_until_ready(_reference_color_loss(X1, Y1))
    assert jnp.allclose(out1, ref1, atol=2e-5, rtol=2e-5), (out1, ref1)

    # A single slightly larger image (exercises the tiled / chunked /
    # dual-parallel-axis path).
    X2 = jax.random.uniform(k3, (1, 3, 128, 128), dtype=jnp.float32)
    Y2 = jax.random.uniform(k4, (1, 3, 128, 128), dtype=jnp.float32)
    out2 = jax.block_until_ready(color_loss(X2, Y2))
    ref2 = jax.block_until_ready(_reference_color_loss(X2, Y2))
    assert jnp.allclose(out2, ref2, atol=2e-5, rtol=2e-5), (out2, ref2)

    print("KERNEL_OK")
</pallas_src>

<mosaic_0001>
module attributes {stable_mosaic.version = 11 : i64} {
  func.func @_color_loss_kernel(%arg0: i32, %arg1: i32, %arg2: i32, %arg3: memref<2x4x2x128xf32, #tpu.memory_space<vmem>>, %arg4: memref<2x4x2x128xf32, #tpu.memory_space<vmem>>, %arg5: memref<2x1x1x128xf32, #tpu.memory_space<vmem>>) attributes {dimension_semantics = [#tpu.dimension_semantics<parallel>, #tpu.dimension_semantics<parallel>, #tpu.dimension_semantics<arbitrary>], iteration_bounds = array<i64: 1, 1, 1>, scalar_prefetch = 0 : i64, scratch_operands = 0 : i64, tpu.core_type = #tpu.core_type<tc>, window_params = [{transform_indices = @transform_0, window_bounds = array<i64: 2, 4, 2, 128>}, {transform_indices = @transform_1, window_bounds = array<i64: 2, 4, 2, 128>}, {transform_indices = @transform_2, window_bounds = array<i64: 2, 1, 1, 128>}]} {
    %c0_i32 = arith.constant 0 : i32
    %0 = arith.cmpi eq, %arg2, %c0_i32 : i32
    %1 = arith.extui %0 : i1 to i32
    %c0_i32_0 = arith.constant 0 : i32
    %2 = arith.cmpi ne, %1, %c0_i32_0 : i32
    scf.if %2 {
      %cst_38 = arith.constant 0.000000e+00 : f32
      %53 = vector.broadcast %cst_38 : f32 to vector<2x1x128xf32>
      %c0_39 = arith.constant 0 : index
      %c0_40 = arith.constant 0 : index
      %c0_41 = arith.constant 0 : index
      %c0_42 = arith.constant 0 : index
      %54 = vector.load %arg5[%c0_39, %c0_40, %c0_41, %c0_42] : memref<2x1x1x128xf32, #tpu.memory_space<vmem>>, vector<2x1x1x128xf32>
      %55 = vector.shape_cast %54 : vector<2x1x1x128xf32> to vector<2x1x128xf32>
      %56 = vector.shape_cast %53 : vector<2x1x128xf32> to vector<2x1x1x128xf32>
      tpu.vector_store %arg5[%c0_39, %c0_40, %c0_41, %c0_42], %56 {strides = array<i32>} : memref<2x1x1x128xf32, #tpu.memory_space<vmem>>, vector<2x1x1x128xf32>,
    } else {
    }
    %c0 = arith.constant 0 : index
    %c0_1 = arith.constant 0 : index
    %c0_2 = arith.constant 0 : index
    %c0_3 = arith.constant 0 : index
    %3 = vector.load %arg3[%c0, %c0_1, %c0_2, %c0_3] : memref<2x4x2x128xf32, #tpu.memory_space<vmem>>, vector<2x1x2x128xf32>
    %4 = vector.shape_cast %3 : vector<2x1x2x128xf32> to vector<2x2x128xf32>
    %c0_4 = arith.constant 0 : index
    %c0_5 = arith.constant 0 : index
    %c0_6 = arith.constant 0 : index
    %c0_7 = arith.constant 0 : index
    %5 = vector.load %arg4[%c0_4, %c0_5, %c0_6, %c0_7] : memref<2x4x2x128xf32, #tpu.memory_space<vmem>>, vector<2x1x2x128xf32>
    %6 = vector.shape_cast %5 : vector<2x1x2x128xf32> to vector<2x2x128xf32>
    %7 = arith.mulf %4, %6 : vector<2x2x128xf32>
    %8 = arith.mulf %4, %4 : vector<2x2x128xf32>
    %9 = arith.mulf %6, %6 : vector<2x2x128xf32>
    %c0_8 = arith.constant 0 : index
    %c1 = arith.constant 1 : index
    %c0_9 = arith.constant 0 : index
    %c0_10 = arith.constant 0 : index
    %10 = vector.load %arg3[%c0_8, %c1, %c0_9, %c0_10] : memref<2x4x2x128xf32, #tpu.memory_space<vmem>>, vector<2x1x2x128xf32>
    %11 = vector.shape_cast %10 : vector<2x1x2x128xf32> to vector<2x2x128xf32>
    %c0_11 = arith.constant 0 : index
    %c1_12 = arith.constant 1 : index
    %c0_13 = arith.constant 0 : index
    %c0_14 = arith.constant 0 : index
    %12 = vector.load %arg4[%c0_11, %c1_12, %c0_13, %c0_14] : memref<2x4x2x128xf32, #tpu.memory_space<vmem>>, vector<2x1x2x128xf32>
    %13 = vector.shape_cast %12 : vector<2x1x2x128xf32> to vector<2x2x128xf32>
    %14 = arith.mulf %11, %13 : vector<2x2x128xf32>
    %15 = arith.addf %7, %14 : vector<2x2x128xf32>
    %16 = arith.mulf %11, %11 : vector<2x2x128xf32>
    %17 = arith.addf %8, %16 : vector<2x2x128xf32>
    %18 = arith.mulf %13, %13 : vector<2x2x128xf32>
    %19 = arith.addf %9, %18 : vector<2x2x128xf32>
    %c0_15 = arith.constant 0 : index
    %c2 = arith.constant 2 : index
    %c0_16 = arith.constant 0 : index
    %c0_17 = arith.constant 0 : index
    %20 = vector.load %arg3[%c0_15, %c2, %c0_16, %c0_17] : memref<2x4x2x128xf32, #tpu.memory_space<vmem>>, vector<2x1x2x128xf32>
    %21 = vector.shape_cast %20 : vector<2x1x2x128xf32> to vector<2x2x128xf32>
    %c0_18 = arith.constant 0 : index
    %c2_19 = arith.constant 2 : index
    %c0_20 = arith.constant 0 : index
    %c0_21 = arith.constant 0 : index
    %22 = vector.load %arg4[%c0_18, %c2_19, %c0_20, %c0_21] : memref<2x4x2x128xf32, #tpu.memory_space<vmem>>, vector<2x1x2x128xf32>
    %23 = vector.shape_cast %22 : vector<2x1x2x128xf32> to vector<2x2x128xf32>
    %24 = arith.mulf %21, %23 : vector<2x2x128xf32>
    %25 = arith.addf %15, %24 : vector<2x2x128xf32>
    %26 = arith.mulf %21, %21 : vector<2x2x128xf32>
    %27 = arith.addf %17, %26 : vector<2x2x128xf32>
    %28 = arith.mulf %23, %23 : vector<2x2x128xf32>
    %29 = arith.addf %19, %28 : vector<2x2x128xf32>
    %c0_22 = arith.constant 0 : index
    %c3 = arith.constant 3 : index
    %c0_23 = arith.constant 0 : index
    %c0_24 = arith.constant 0 : index
    %30 = vector.load %arg3[%c0_22, %c3, %c0_23, %c0_24] : memref<2x4x2x128xf32, #tpu.memory_space<vmem>>, vector<2x1x2x128xf32>
    %31 = vector.shape_cast %30 : vector<2x1x2x128xf32> to vector<2x2x128xf32>
    %c0_25 = arith.constant 0 : index
    %c3_26 = arith.constant 3 : index
    %c0_27 = arith.constant 0 : index
    %c0_28 = arith.constant 0 : index
    %32 = vector.load %arg4[%c0_25, %c3_26, %c0_27, %c0_28] : memref<2x4x2x128xf32, #tpu.memory_space<vmem>>, vector<2x1x2x128xf32>
    %33 = vector.shape_cast %32 : vector<2x1x2x128xf32> to vector<2x2x128xf32>
    %34 = arith.mulf %31, %33 : vector<2x2x128xf32>
    %35 = arith.addf %25, %34 : vector<2x2x128xf32>
    %36 = arith.mulf %31, %31 : vector<2x2x128xf32>
    %37 = arith.addf %27, %36 : vector<2x2x128xf32>
    %38 = arith.mulf %33, %33 : vector<2x2x128xf32>
    %39 = arith.addf %29, %38 : vector<2x2x128xf32>
    %40 = arith.mulf %37, %39 : vector<2x2x128xf32>
    %cst = arith.constant 9.99999996E-13 : f32
    %41 = vector.broadcast %cst : f32 to vector<2x2x128xf32>
    %42 = arith.maximumf %40, %41 : vector<2x2x128xf32>
    %43 = math.rsqrt %42 : vector<2x2x128xf32>
    %44 = arith.mulf %35, %43 : vector<2x2x128xf32>
    %c0_29 = arith.constant 0 : index
    %c0_30 = arith.constant 0 : index
    %c0_31 = arith.constant 0 : index
    %c0_32 = arith.constant 0 : index
    %45 = vector.load %arg5[%c0_29, %c0_30, %c0_31, %c0_32] : memref<2x1x1x128xf32, #tpu.memory_space<vmem>>, vector<2x1x1x128xf32>
    %46 = vector.shape_cast %45 : vector<2x1x1x128xf32> to vector<2x1x128xf32>
    %cst_33 = arith.constant dense<0.000000e+00> : vector<2x128xf32>
    %47 = vector.multi_reduction <add>, %44, %cst_33 [1] : vector<2x2x128xf32> to vector<2x128xf32>
    %48 = vector.shape_cast %47 : vector<2x128xf32> to vector<2x1x128xf32>
    %49 = arith.addf %46, %48 : vector<2x1x128xf32>
    %c0_34 = arith.constant 0 : index
    %c0_35 = arith.constant 0 : index
    %c0_36 = arith.constant 0 : index
    %c0_37 = arith.constant 0 : index
    %50 = vector.load %arg5[%c0_34, %c0_35, %c0_36, %c0_37] : memref<2x1x1x128xf32, #tpu.memory_space<vmem>>, vector<2x1x1x128xf32>
    %51 = vector.shape_cast %50 : vector<2x1x1x128xf32> to vector<2x1x128xf32>
    %52 = vector.shape_cast %49 : vector<2x1x128xf32> to vector<2x1x1x128xf32>
    tpu.vector_store %arg5[%c0_34, %c0_35, %c0_36, %c0_37], %52 {strides = array<i32>} : memref<2x1x1x128xf32, #tpu.memory_space<vmem>>, vector<2x1x1x128xf32>,
    return
  }
  func.func @transform_0(%arg0: i32, %arg1: i32, %arg2: i32) -> (i32, i32, i32, i32) {
    %c1_i32 = arith.constant 1 : i32
    %0 = arith.muli %arg1, %c1_i32 : i32
    %1 = arith.addi %0, %arg2 : i32
    %c0_i32 = arith.constant 0 : i32
    %c0_i32_0 = arith.constant 0 : i32
    %c0_i32_1 = arith.constant 0 : i32
    return %arg0, %c0_i32, %1, %c0_i32_0 : i32, i32, i32, i32
  }
  func.func @transform_1(%arg0: i32, %arg1: i32, %arg2: i32) -> (i32, i32, i32, i32) {
    %c1_i32 = arith.constant 1 : i32
    %0 = arith.muli %arg1, %c1_i32 : i32
    %1 = arith.addi %0, %arg2 : i32
    %c0_i32 = arith.constant 0 : i32
    %c0_i32_0 = arith.constant 0 : i32
    %c0_i32_1 = arith.constant 0 : i32
    return %arg0, %c0_i32, %1, %c0_i32_0 : i32, i32, i32, i32
  }
  func.func @transform_2(%arg0: i32, %arg1: i32, %arg2: i32) -> (i32, i32, i32, i32) {
    %c0_i32 = arith.constant 0 : i32
    %c0_i32_0 = arith.constant 0 : i32
    %c0_i32_1 = arith.constant 0 : i32
    return %arg0, %arg1, %c0_i32, %c0_i32_0 : i32, i32, i32, i32
  }
}

</mosaic_0001>

<bundles_post_ra>
// kernel: tpu_custom_call.1
= control target key start
LH: loop header
LB: loop body
LE: loop exit
PB: predicated region body
PF: predicated region fallthrough
CT: control target
= control target key end

     0   :  { %7 = vsyncpa [#allocation3], 0  ;;  %s308_s0 = inlined_call_operand.hbm [shape: f32[2,4,2,128], index: 0, kind: input, shape index: {}]   ;;  %s309_s1 = inlined_call_operand.hbm [shape: f32[2,4,2,128], index: 1, kind: input, shape index: {}]   ;;  %s310_s2 = inlined_call_operand.hbm [shape: f32[2,1,1,128], index: 2, kind: output, shape index: {}]  }
   0x1   :  { %8 = vsyncpa [#allocation6], 0 }
   0x2   :  { %9 = vsyncpa [#allocation4], 0  ;;  %s249_s9 = smov [#allocation2]   ;;  %s177_s13 = scalar_lea.hbm %s308_s0, 256 }
   0x3   :  { %s18_s10 = sshll.u32 %s249_s9, 4  ;;  %p178_p0 = scmp.ne.s32.totalorder %s308_s0, %s177_s13  ;;  %s19_s10 = int_to_ptr.vmem [resolvable:$true] %s18_s10 }
   0x4   :  { %p181_p1 = scmp.lt.u32.totalorder %s177_s13, %s308_s0 }
   0x6   :  { %p183_p2 = pnand %p181_p1, %p178_p0 }
   0x8   :  { %186 = shalt.err (!%p183_p2)
}
   0x9   :  { %s187_s18 = scalar_lea.vmem %s19_s10, 256  ;;  %p192_p4 = scmp.lt.s32.totalorder %s19_s10, %s19_s10 }
   0xa   :  { %p188_p3 = scmp.ne.s32.totalorder %s19_s10, %s187_s18  ;;  %p193_p5 = scmp.lt.s32.totalorder %s187_s18, %s187_s18 }
   0xc   :  { %p194_p6 = por %p193_p5, %p192_p4 }
   0xe   :  { %p195_p7 = pnand %p194_p6, %p188_p3 }
  0x10   :  { %198 = shalt.err (!%p195_p7)
}
  0x11   :  { %s250_s19 = smov 32   ;;  %s251_s20 = smov 2  }
  0x12   :  { %24 = dma.hbm_to_vmem [thread:$0]  %s308_s0, 256, %s19_s10, [#allocation3], %s250_s19, %s250_s19, %s251_s20  }
  0x13   :  { %s252_s23 = smov [#allocation5]   ;;  %s199_s27 = scalar_lea.hbm %s309_s1, 256 }
  0x14   :  { %s33_s24 = sshll.u32 %s252_s23, 4  ;;  %p200_p8 = scmp.ne.s32.totalorder %s309_s1, %s199_s27  ;;  %s34_s24 = int_to_ptr.vmem [resolvable:$true] %s33_s24 }
  0x15   :  { %p203_p9 = scmp.lt.u32.totalorder %s199_s27, %s309_s1 }
  0x17   :  { %p205_p10 = pnand %p203_p9, %p200_p8 }
  0x19   :  { %208 = shalt.err (!%p205_p10)
}
  0x1a   :  { %s209_s4 = scalar_lea.vmem %s34_s24, 256  ;;  %p214_p12 = scmp.lt.s32.totalorder %s34_s24, %s34_s24 }
  0x1b   :  { %p210_p11 = scmp.ne.s32.totalorder %s34_s24, %s209_s4  ;;  %p215_p13 = scmp.lt.s32.totalorder %s209_s4, %s209_s4 }
  0x1d   :  { %p216_p0 = por %p215_p13, %p214_p12 }
  0x1f   :  { %p217_p1 = pnand %p216_p0, %p210_p11 }
  0x21   :  { %220 = shalt.err (!%p217_p1)
}
  0x22   :  { %39 = dma.hbm_to_vmem [thread:$0]  %s309_s1, 256, %s34_s24, [#allocation6], %s250_s19, %s250_s19, %s251_s20  }
  0x23   :  { %243 = dma.done.wait [#allocation3], 256  }
  0x24   :  { %244 = vsyncadd [#allocation3], 4294967040 }
  0x25   :  { %245 = dma.done.wait [#allocation6], 256  }
  0x26   :  { %246 = vsyncadd [#allocation6], 4294967040  ;;  %v253_v0 = vmov 0.0   ;;  %v54_v1 = vld [vmem:[#allocation2] sm:$0x3]  ;;  %vm128_vm0 = vcmask 1041408  }
  0x27   :  { %52 = vst [vmem:[#allocation7] sm:$0x1] %v253_v0  ;;  %53 = vst [vmem:[#allocation7 + $0x1] sm:$0x1] %v253_v0  ;;  %v56_v2 = vld [vmem:[#allocation5] sm:$0x3]  ;;  %v60_v4 = vmul.f32 %v54_v1, %v54_v1 }
  0x28   :  { %v65_v3 = vld [vmem:[#allocation2 + $0x2] sm:$0x3]  ;;  %v62_v5 = vmul.f32 %v56_v2, %v56_v2  ;;  %v68_v6 = vld [vmem:[#allocation5 + $0x2] sm:$0x3]  ;;  %v83_v8 = vld [vmem:[#allocation2 + $0x4] sm:$0x3]  ;;  %v58_v38 = vmul.f32 %v56_v2, %v54_v1 }
  0x29   :  { %v74_v7 = vmul.f32 %v65_v3, %v65_v3  ;;  %v86_v9 = vld [vmem:[#allocation5 + $0x4] sm:$0x3]  ;;  %v78_v10 = vmul.f32 %v68_v6, %v68_v6  ;;  %v92_v11 = vmul.f32 %v83_v8, %v83_v8  ;;  %v101_v12 = vld [vmem:[#allocation2 + $0x6] sm:$0x3]  ;;  %v104_v13 = vld [vmem:[#allocation5 + $0x6] sm:$0x3]  ;;  %v70_v39 = vmul.f32 %v68_v6, %v65_v3 }
  0x2a   :  { %v96_v15 = vmul.f32 %v86_v9, %v86_v9  ;;  %v110_v16 = vmul.f32 %v101_v12, %v101_v12  ;;  %v55_v17 = vld [vmem:[#allocation2 + $0x8] sm:$0x3]  ;;  %v57_v18 = vld [vmem:[#allocation5 + $0x8] sm:$0x3]  ;;  %v66_v19 = vld [vmem:[#allocation2 + $0xa] sm:$0x3]  ;;  %v114_v21 = vmul.f32 %v104_v13, %v104_v13  ;;  %v88_v49 = vmul.f32 %v86_v9, %v83_v8 }
  0x2b   :  { %v76_v14 = vadd.f32 %v74_v7, %v60_v4  ;;  %v80_v20 = vadd.f32 %v78_v10, %v62_v5  ;;  %v69_v22 = vld [vmem:[#allocation5 + $0xa] sm:$0x3]  ;;  %v84_v23 = vld [vmem:[#allocation2 + $0xc] sm:$0x3]  ;;  %v61_v25 = vmul.f32 %v55_v17, %v55_v17  ;;  %v63_v26 = vmul.f32 %v57_v18, %v57_v18  ;;  %v87_v30 = vld [vmem:[#allocation5 + $0xc] sm:$0x3] }
  0x2c   :  { %v75_v28 = vmul.f32 %v66_v19, %v66_v19  ;;  %v79_v29 = vmul.f32 %v69_v22, %v69_v22  ;;  %v102_v31 = vld [vmem:[#allocation2 + $0xe] sm:$0x3]  ;;  %v93_v33 = vmul.f32 %v84_v23, %v84_v23  ;;  %v105_v34 = vld [vmem:[#allocation5 + $0xe] sm:$0x3]  ;;  %v97_v40 = vmul.f32 %v87_v30, %v87_v30  ;;  %s254_s1 = smov [#allocation7]  }
  0x2d   :  { %v94_v24 = vadd.f32 %v92_v11, %v76_v14  ;;  %v98_v27 = vadd.f32 %v96_v15, %v80_v20  ;;  %v111_v41 = vmul.f32 %v102_v31, %v102_v31  ;;  %v115_v44 = vmul.f32 %v105_v34, %v105_v34  ;;  %s152_s6 = sshll.u32 %s254_s1, 4  ;;  %s153_s6 = int_to_ptr.vmem [resolvable:$true] %s152_s6 }
  0x2e   :  { %v77_v36 = vadd.f32 %v75_v28, %v61_v25  ;;  %v81_v37 = vadd.f32 %v79_v29, %v63_v26  ;;  %v72_v48 = vadd.f32 %v70_v39, %v58_v38  ;;  %v59_v51 = vmul.f32 %v57_v18, %v55_v17  ;;  %v127_v18 = vld [vmem:[#allocation7 + $0x1] sm:$0x1]  ;;  %s221_s7 = scalar_lea.vmem %s153_s6, 32  ;;  %p226_p3 = scmp.lt.s32.totalorder %s153_s6, %s153_s6 }
  0x2f   :  { %v112_v32 = vadd.f32 %v110_v16, %v94_v24  ;;  %v116_v35 = vadd.f32 %v114_v21, %v98_v27  ;;  %v71_v52 = vmul.f32 %v69_v22, %v66_v19  ;;  %v106_v55 = vmul.f32 %v104_v13, %v101_v12  ;;  %v126_v12 = vld [vmem:[#allocation7] sm:$0x1]  ;;  %p222_p2 = scmp.ne.s32.totalorder %s153_s6, %s221_s7  ;;  %p227_p4 = scmp.lt.s32.totalorder %s221_s7, %s221_s7 }
  0x30   :  { %v95_v43 = vadd.f32 %v93_v33, %v77_v36  ;;  %v99_v45 = vadd.f32 %v97_v40, %v81_v37  ;;  %v90_v54 = vadd.f32 %v88_v49, %v72_v48  ;;  %v89_v58 = vmul.f32 %v87_v30, %v84_v23 }
  0x31   :  { %v118_v42 = vmul.f32 %v116_v35, %v112_v32  ;;  %v73_v57 = vadd.f32 %v71_v52, %v59_v51  ;;  %v107_v61 = vmul.f32 %v105_v34, %v102_v31  ;;  %p228_p5 = por %p227_p4, %p226_p3 }
  0x32   :  { %v113_v47 = vadd.f32 %v111_v41, %v95_v43  ;;  %v117_v50 = vadd.f32 %v115_v44, %v99_v45  ;;  %v108_v59 = vadd.f32 %v106_v55, %v90_v54 }
  0x33   :  { %v120_v46 = vmax.f32 %v118_v42, 1e-12  ;;  %v91_v60 = vadd.f32 %v89_v58, %v73_v57  ;;  %p229_p6 = pnand %p228_p5, %p222_p2 }
  0x34   :  { %v119_v53 = vmul.f32 %v117_v50, %v113_v47 }
  0x35   :  { %173 = vrsqrt.f32 %v120_v46  ;;  %v109_v0 = vadd.f32 %v107_v61, %v91_v60 }
  0x36   :  { %v121_v56 = vmax.f32 %v119_v53, 1e-12 }
  0x38   :  { %175 = vrsqrt.f32 %v121_v56 }
  0x3f   :  { %v174_v62 = vpop.eup %173 }
  0x40   :  { %v124_v63 = vmul.f32 %v174_v62, %v108_v59 }
  0x42   :  { %v129_v1 = vsel %vm128_vm0, %v124_v63, 0.0  ;;  %v176_v3 = vpop.eup %175 }
  0x43   :  { %v130_v2 = vrot.slane %v129_v1, 4  ;;  %v125_v5 = vmul.f32 %v176_v3, %v109_v0 }
  0x45   :  { %v131_v4 = vadd.f32 %v130_v2, %v129_v1  ;;  %v136_v7 = vsel %vm128_vm0, %v125_v5, 0.0 }
  0x46   :  { %v137_v8 = vrot.slane %v136_v7, 4 }
  0x47   :  { %v132_v6 = vrot.slane %v131_v4, 2 }
  0x48   :  { %v138_v10 = vadd.f32 %v137_v8, %v136_v7 }
  0x49   :  { %v133_v9 = vadd.f32 %v132_v6, %v131_v4 }
  0x4a   :  { %v139_v13 = vrot.slane %v138_v10, 2 }
  0x4b   :  { %v134_v11 = vrot.slane %v133_v9, 1 }
  0x4c   :  { %v140_v15 = vadd.f32 %v139_v13, %v138_v10 }
  0x4d   :  { %v135_v14 = vadd.f32 %v134_v11, %v133_v9 }
  0x4e   :  { %v141_v17 = vrot.slane %v140_v15, 1 }
  0x4f   :  { %v143_v16 = vadd.f32 %v135_v14, %v126_v12 }
  0x50   :  { %v142_v19 = vadd.f32 %v141_v17, %v140_v15 }
  0x51   :  { %145 = vst [vmem:[#allocation7] sm:$0x1] %v143_v16 }
  0x52   :  { %v144_v20 = vadd.f32 %v142_v19, %v127_v18 }
  0x54   :  { %146 = vst [vmem:[#allocation7 + $0x1] sm:$0x1] %v144_v20 }
  0x55   :  { %232 = shalt.err (!%p229_p6)
}
  0x56   :  { %s233_s10 = scalar_lea.hbm %s310_s2, 32 }
  0x57   :  { %p234_p7 = scmp.ne.s32.totalorder %s310_s2, %s233_s10  ;;  %p237_p8 = scmp.lt.u32.totalorder %s233_s10, %s310_s2 }
  0x59   :  { %p239_p9 = pnand %p237_p8, %p234_p7 }
  0x5b   :  { %242 = shalt.err (!%p239_p9)
}
  0x5c   :  { %s255_s15 = smov 16   ;;  %s256_s16 = smov 1  }
  0x5d   :  { %158 = dma.vmem_to_hbm [thread:$0]  %s153_s6, 32, %s310_s2, [#allocation4], %s255_s15, %s255_s15, %s256_s16  }
  0x5e   :  { %247 = dma.done.wait [#allocation4], 32  }
  0x5f   :  { %248 = vsyncadd [#allocation4], 4294967264 }
  0x60   :  { %162 = vsyncpa [#allocation3], 1 }
  0x61   :  { %163 = vsyncpa [#allocation6], 1 }
  0x62   :  { %164 = vsyncpa [#allocation4], 1 }

</bundles_post_ra>
